<compile_context>
chip_gen: v5e
topology: v5e:2x2
jax: 0.10.0
libtpu: 0.0.40
codegen_flags: <defaults>
</compile_context>

<pallas_src>
import jax
import jax.numpy as jnp
from jax.experimental import pallas as pl
from jax.experimental.pallas import tpu as pltpu

DROPOUT_P = 0.4
INV_SCALE = 512.0
QK_SCALE = (0.1 * 0.2) / INV_SCALE          # fold q-scale, k-scale and 1/512
V_KEEP_SCALE = 0.3 / (1.0 - DROPOUT_P)      # fold v-scale into dropout keep-scale


def sdpa_last_kernel(x_ref, u_ref, o_ref):
    # x_ref block: (1, N, N) — the single batch element we need (B-1).
    x = x_ref[0].astype(jnp.float32)                          # (N, N)

    # (q * k^T) / 512 == x * x.T * QK_SCALE   (elementwise, per the module)
    s = x * x.T * QK_SCALE

    # softmax over last dim
    m = jnp.max(s, axis=-1, keepdims=True)
    e = jnp.exp(s - m)
    soft = e * pl.reciprocal(jnp.sum(e, axis=-1, keepdims=True), approx=True)

    # inverted dropout with the v-scale folded in: keep -> * 0.3/(1-p), drop -> 0
    keep = u_ref[...] >= DROPOUT_P
    dropped = jnp.where(keep, soft * V_KEEP_SCALE, 0.0)

    # output = dropout_qk @ v == dropped @ x   (v's 0.3 already folded above)
    out = jnp.dot(dropped, x, preferred_element_type=jnp.float32)
    o_ref[...] = out.astype(o_ref.dtype)


def model_forward(x, dropout_key):
    """Pallas implementation of Model.forward. Returns output[-1], shape (N, N)."""
    B, N, N2 = x.shape
    assert N == N2, "module requires square last two dims (q1 * k1.T broadcast)"

    # Dropout uniforms only for the batch element we actually compute.
    u = jax.random.uniform(dropout_key, (N, N), dtype=jnp.float32)

    out = pl.pallas_call(
        sdpa_last_kernel,
        out_shape=jax.ShapeDtypeStruct((N, N), x.dtype),
        grid=(1,),
        in_specs=[
            # Pin the input block to the last batch element: only (N, N) floats
            # are ever moved from HBM.
            pl.BlockSpec((1, N, N), lambda i: (B - 1, 0, 0)),
            pl.BlockSpec((N, N), lambda i: (0, 0)),
        ],
        out_specs=pl.BlockSpec((N, N), lambda i: (0, 0)),
        compiler_params=pltpu.CompilerParams(
            dimension_semantics=("arbitrary",)),
    )(x, u)
    return out, u


def reference_forward(x, u):
    """Pure-JAX reference (same dropout uniforms) for a correctness check."""
    xb = x[-1].astype(jnp.float32)
    s = xb * xb.T * QK_SCALE
    soft = jax.nn.softmax(s, axis=-1)
    dropped = jnp.where(u >= DROPOUT_P, soft * V_KEEP_SCALE, 0.0)
    return dropped @ xb


if __name__ == "__main__":
    key = jax.random.PRNGKey(0)
    kx, kd = jax.random.split(key)
    # Small shape consistent with the module: (B, N, N), square last two dims.
    x = jax.random.normal(kx, (4, 16, 16), dtype=jnp.float32)

    result, u = model_forward(x, kd)
    result = jax.block_until_ready(result)

    assert result.shape == (16, 16)
    assert bool(jnp.all(jnp.isfinite(result)))

    ref = reference_forward(x, u)
    assert bool(jnp.allclose(result, ref, rtol=1e-4, atol=1e-5)), "mismatch vs reference"

    print("KERNEL_OK")
</pallas_src>

<mosaic_0001>
module attributes {stable_mosaic.version = 11 : i64} {
  func.func @sdpa_last_kernel(%arg0: i32, %arg1: memref<1x16x16xf32, #tpu.memory_space<vmem>>, %arg2: memref<16x16xf32, #tpu.memory_space<vmem>>, %arg3: memref<16x16xf32, #tpu.memory_space<vmem>>) attributes {dimension_semantics = [#tpu.dimension_semantics<arbitrary>], iteration_bounds = array<i64: 1>, scalar_prefetch = 0 : i64, scratch_operands = 0 : i64, tpu.core_type = #tpu.core_type<tc>, window_params = [{transform_indices = @transform_0, window_bounds = array<i64: 1, 16, 16>}, {pipeline_mode = #tpu.pipeline_mode<synchronous>, transform_indices = @transform_1, window_bounds = array<i64: 16, 16>}, {pipeline_mode = #tpu.pipeline_mode<synchronous>, transform_indices = @transform_2, window_bounds = array<i64: 16, 16>}]} {
    %c0 = arith.constant 0 : index
    %c0_0 = arith.constant 0 : index
    %c0_1 = arith.constant 0 : index
    %0 = vector.load %arg1[%c0, %c0_0, %c0_1] : memref<1x16x16xf32, #tpu.memory_space<vmem>>, vector<1x16x16xf32>
    %1 = vector.shape_cast %0 : vector<1x16x16xf32> to vector<16x16xf32>
    %2 = tpu.transpose %1, [1, 0] : vector<16x16xf32> -> vector<16x16xf32>
    %3 = arith.mulf %1, %2 : vector<16x16xf32>
    %cst = arith.constant 3.906250e-05 : f32
    %4 = vector.broadcast %cst : f32 to vector<16x16xf32>
    %5 = arith.mulf %3, %4 : vector<16x16xf32>
    %cst_2 = arith.constant dense<0xFF800000> : vector<16xf32>
    %6 = vector.multi_reduction <maximumf>, %5, %cst_2 [1] : vector<16x16xf32> to vector<16xf32>
    %7 = vector.shape_cast %6 : vector<16xf32> to vector<16x1xf32>
    %8 = vector.broadcast %7 : vector<16x1xf32> to vector<16x16xf32>
    %9 = arith.subf %5, %8 : vector<16x16xf32>
    %10 = math.exp %9 : vector<16x16xf32>
    %cst_3 = arith.constant dense<0.000000e+00> : vector<16xf32>
    %11 = vector.multi_reduction <add>, %10, %cst_3 [1] : vector<16x16xf32> to vector<16xf32>
    %12 = vector.shape_cast %11 : vector<16xf32> to vector<16x1xf32>
    %13 = tpu.reciprocal %12 {approx = true} : vector<16x1xf32> -> vector<16x1xf32>
    %14 = vector.broadcast %13 : vector<16x1xf32> to vector<16x16xf32>
    %15 = arith.mulf %10, %14 : vector<16x16xf32>
    %c0_4 = arith.constant 0 : index
    %c0_5 = arith.constant 0 : index
    %16 = vector.load %arg2[%c0_4, %c0_5] : memref<16x16xf32, #tpu.memory_space<vmem>>, vector<16x16xf32>
    %cst_6 = arith.constant 4.000000e-01 : f32
    %17 = vector.broadcast %cst_6 : f32 to vector<16x16xf32>
    %18 = arith.cmpf oge, %16, %17 : vector<16x16xf32>
    %cst_7 = arith.constant 5.000000e-01 : f32
    %19 = vector.broadcast %cst_7 : f32 to vector<16x16xf32>
    %20 = arith.mulf %15, %19 : vector<16x16xf32>
    %cst_8 = arith.constant 0.000000e+00 : f32
    %21 = vector.broadcast %cst_8 : f32 to vector<16x16xf32>
    %22 = arith.select %18, %20, %21 : vector<16x16xi1>, vector<16x16xf32>
    %cst_9 = arith.constant dense<0.000000e+00> : vector<16x16xf32>
    %23 = tpu.matmul %22, %1, %cst_9 {dimension_numbers = #tpu.dot_dimension_numbers<[1], [0], [0], [1], [0, 0, 1, 1], [], []>} : vector<16x16xf32>, vector<16x16xf32>, vector<16x16xf32> -> vector<16x16xf32>
    %c0_10 = arith.constant 0 : index
    %c0_11 = arith.constant 0 : index
    %24 = vector.load %arg3[%c0_10, %c0_11] : memref<16x16xf32, #tpu.memory_space<vmem>>, vector<16x16xf32>
    tpu.vector_store %arg3[%c0_10, %c0_11], %23 {strides = array<i32>} : memref<16x16xf32, #tpu.memory_space<vmem>>, vector<16x16xf32>,
    return
  }
  func.func @transform_0(%arg0: i32) -> (i32, i32, i32) {
    %c3_i32 = arith.constant 3 : i32
    %c0_i32 = arith.constant 0 : i32
    %c0_i32_0 = arith.constant 0 : i32
    %c0_i32_1 = arith.constant 0 : i32
    return %c3_i32, %c0_i32, %c0_i32_0 : i32, i32, i32
  }
  func.func @transform_1(%arg0: i32) -> (i32, i32) {
    %c0_i32 = arith.constant 0 : i32
    %c0_i32_0 = arith.constant 0 : i32
    %c0_i32_1 = arith.constant 0 : i32
    return %c0_i32, %c0_i32_0 : i32, i32
  }
  func.func @transform_2(%arg0: i32) -> (i32, i32) {
    %c0_i32 = arith.constant 0 : i32
    %c0_i32_0 = arith.constant 0 : i32
    %c0_i32_1 = arith.constant 0 : i32
    return %c0_i32, %c0_i32_0 : i32, i32
  }
}

</mosaic_0001>

<bundles_post_ra>
// kernel: tpu_custom_call.1
= control target key start
LH: loop header
LB: loop body
LE: loop exit
PB: predicated region body
PF: predicated region fallthrough
CT: control target
= control target key end

     0   :  { %7 = vsyncpa [#allocation3], 0  ;;  %s307_s0 = inlined_call_operand.hbm [shape: f32[4,16,16], index: 0, kind: input, shape index: {}]   ;;  %s308_s1 = inlined_call_operand.hbm [shape: f32[16,16], index: 1, kind: input, shape index: {}]   ;;  %s309_s2 = inlined_call_operand.hbm [shape: f32[16,16], index: 2, kind: output, shape index: {}]  }
   0x1   :  { %8 = vsyncpa [#allocation6], 0 }
   0x2   :  { %9 = vsyncpa [#allocation4], 0  ;;  %s14_s11 = scalar_lea.hbm %s307_s0, 48  ;;  %s261_s13 = smov [#allocation2]  }
   0x3   :  { %s15_s12 = sshll.u32 %s14_s11, 4  ;;  %s17_s14 = sshll.u32 %s261_s13, 4  ;;  %s16_s12 = int_to_ptr.hbm [resolvable:$true] %s15_s12  ;;  %s18_s14 = int_to_ptr.vmem [resolvable:$true] %s17_s14 }
   0x4   :  { %s262_s15 = smov 128   ;;  %s263_s16 = smov 8  }
   0x5   :  { %23 = dma.hbm_to_vmem [thread:$0]  %s16_s12, 256, %s18_s14, [#allocation3], %s262_s15, %s262_s15, %s263_s16  }
   0x6   :  { %s28_s19 = sshll.u32 %s308_s1, 4  ;;  %s264_s20 = smov [#allocation5]   ;;  %s29_s19 = int_to_ptr.hbm [resolvable:$true] %s28_s19 }
   0x7   :  { %s30_s21 = sshll.u32 %s264_s20, 4  ;;  %s31_s21 = int_to_ptr.vmem [resolvable:$true] %s30_s21 }
   0x8   :  { %36 = dma.hbm_to_vmem [thread:$0]  %s29_s19, 256, %s31_s21, [#allocation6], %s262_s15, %s262_s15, %s263_s16  }
   0x9   :  { %255 = dma.done.wait [#allocation3], 256  }
   0xa   :  { %256 = vsyncadd [#allocation3], 4294967040 }
   0xb   :  { %257 = dma.done.wait [#allocation6], 256  }
   0xc   :  { %258 = vsyncadd [#allocation6], 4294967040  ;;  %v45_v0 = vld [vmem:[#allocation2] sm:$0xff]  ;;  %v46_v1 = vld [vmem:[#allocation2 + $0x8] sm:$0xff]  ;;  %vm83_vm0 = vcmask 130048   ;;  %s265_s0 = smov [#allocation7]  }
   0xd   :  { %47 = vxpose.xlu0.b32.start [1/2] (short) (narrow) %v45_v0, 16  ;;  %134 = vmatpush.msra.mxu0 %v46_v1  ;;  %v106_v21 = vld [vmem:[#allocation5] sm:$0xff]  ;;  %v107_v27 = vld [vmem:[#allocation5 + $0x8] sm:$0xff]  ;;  %s149_s1 = sshll.u32 %s265_s0, 4  ;;  %s151_s24 = sshll.u32 %s309_s2, 4  ;;  %s150_s1 = int_to_ptr.vmem [resolvable:$true] %s149_s1  ;;  %s152_s24 = int_to_ptr.hbm [resolvable:$true] %s151_s24 }
   0xe   :  { %167 = vmatpush.msra.mxu1 %v46_v1  ;;  %vm108_vm1 = vcmp.ge.f32.partialorder %v106_v21, 0.4  ;;  %vm109_vm2 = vcmp.ge.f32.partialorder %v107_v27, 0.4 }
   0xf   :  { %135 = vmatpush.msra.mxu0 %v45_v0 }
  0x10   :  { %168 = vmatpush.msra.mxu1 %v45_v0 }
  0x15   :  { %48 = vxpose.xlu0.b32.end [2/2] (short) (narrow) %v46_v1, 16 }
  0xb1   :  { %v63_v2 = vpop.trf.xlu0 }
  0xb2   :  { %v79_v3 = vmul.f32 %v63_v2, %v45_v0 }
  0xb4   :  { %v81_v4 = vmul.f32 3.90625e-05, %v79_v3 }
  0xb6   :  { %v84_v5 = vsel %vm83_vm0, %v81_v4, -inf }
  0xb7   :  { %85 = vmax.xlane.f32.xlu1 %v84_v5 }
  0xb9   :  { %v64_v6 = vpop.trf.xlu0 }
  0xba   :  { %v80_v7 = vmul.f32 %v64_v6, %v46_v1 }
  0xbc   :  { %v82_v8 = vmul.f32 3.90625e-05, %v80_v7 }
  0xbe   :  { %v87_v9 = vsel %vm83_vm0, %v82_v8, -inf }
  0xbf   :  { %88 = vmax.xlane.f32.xlu1 %v87_v9 }
 0x12a   :  { %v86_v10 = vpop.xlane.xlu1 %85 }
 0x12b   :  { %v90_v11 = vsub.f32 %v81_v4, %v86_v10 }
 0x12d   :  { %v92_v12 = vmul.f32 1.442695, %v90_v11 }
 0x12f   :  { %175 = vpow2.f32 %v92_v12 }
 0x132   :  { %v89_v13 = vpop.xlane.xlu1 %88 }
 0x133   :  { %v91_v14 = vsub.f32 %v82_v8, %v89_v13 }
 0x135   :  { %v176_v15 = vpop.eup %175  ;;  %v94_v16 = vmul.f32 1.442695, %v91_v14 }
 0x136   :  { %v96_v17 = vsel %vm83_vm0, %v176_v15, 0.0 }
 0x137   :  { %177 = vpow2.f32 %v94_v16  ;;  %97 = vadd.xlane.f32.xlu2 %v96_v17 }
 0x13d   :  { %v178_v18 = vpop.eup %177 }
 0x13e   :  { %v99_v19 = vsel %vm83_vm0, %v178_v18, 0.0 }
 0x13f   :  { %100 = vadd.xlane.f32.xlu2 %v99_v19 }
 0x1aa   :  { %v98_v20 = vpop.xlane.xlu2 %97 }
 0x1ab   :  { %179 = vrcp.f32 %v98_v20 }
 0x1b1   :  { %v180_v22 = vpop.eup %179 }
 0x1b2   :  { %v101_v23 = vpop.xlane.xlu2 %100  ;;  %v104_v24 = vmul.f32 %v180_v22, %v176_v15 }
 0x1b3   :  { %181 = vrcp.f32 %v101_v23 }
 0x1b4   :  { %v110_v25 = vmul.f32 0.5, %v104_v24 }
 0x1b6   :  { %v112_v26 = vsel %vm108_vm1, %v110_v25, 0.0 }
 0x1b7   :  { %165 = vmatmul.msk.f32.vlgmr.msra.gmra.mxu0 %vm83_vm0, %v112_v26 }
 0x1b9   :  { %v182_v28 = vpop.eup %181 }
 0x1ba   :  { %v105_v29 = vmul.f32 %v182_v28, %v178_v18 }
 0x1bc   :  { %v111_v30 = vmul.f32 0.5, %v105_v29 }
 0x1be   :  { %v113_v31 = vsel %vm109_vm2, %v111_v30, 0.0 }
 0x1bf   :  { %166 = vmatmul.msk.f32.vlgmr.msra.gmra.mxu1 %vm83_vm0, %v113_v31 }
 0x234   :  { %v137_v32 = vpop.f32.mrf.mxu0 }
 0x235   :  { %143 = vst.msk [vmem:[#allocation7] sm:$0xff] %vm83_vm0, %v137_v32 }
 0x23c   :  { %v140_v33 = vpop.f32.mrf.mxu1 }
 0x23d   :  { %144 = vst.msk [vmem:[#allocation7 + $0x8] sm:$0xff] %vm83_vm0, %v140_v33 }
 0x23e   :  { %157 = dma.vmem_to_hbm [thread:$0]  %s150_s1, 256, %s152_s24, [#allocation4], %s262_s15, %s262_s15, %s263_s16  }
 0x23f   :  { %259 = dma.done.wait [#allocation4], 256  }
 0x240   :  { %260 = vsyncadd [#allocation4], 4294967040 }
 0x241   :  { %162 = vsyncpa [#allocation3], 1 }
 0x242   :  { %163 = vsyncpa [#allocation6], 1 }
 0x243   :  { %164 = vsyncpa [#allocation4], 1 }

</bundles_post_ra>
